<compile_context>
chip_gen: v5e
topology: v5e:2x2
jax: 0.10.0
libtpu: 0.0.40
codegen_flags: <defaults>
</compile_context>

<pallas_src>
import math
import functools

import jax
import jax.numpy as jnp
from jax.experimental import pallas as pl
from jax.experimental.pallas import tpu as pltpu


# ----------------------------------------------------------------------------
# Parameter (buffer) setup — plain JAX glue, mirrors the PyTorch __init__.
# ----------------------------------------------------------------------------
def make_pe(d_model: int, max_len: int = 5000, dtype=jnp.float32):
    position = jnp.arange(max_len, dtype=jnp.float32)[:, None]                 # (max_len, 1)
    div_term = jnp.exp(
        jnp.arange(0, d_model, 2, dtype=jnp.float32) * (-math.log(10000.0) / d_model)
    )                                                                          # (d_model/2,)
    pe = jnp.zeros((max_len, 1, d_model), dtype=jnp.float32)
    pe = pe.at[:, 0, 0::2].set(jnp.sin(position * div_term))
    pe = pe.at[:, 0, 1::2].set(jnp.cos(position * div_term))
    return pe.astype(dtype)


# ----------------------------------------------------------------------------
# Kernels
# ----------------------------------------------------------------------------
def _pe_add_kernel(x_ref, pe_ref, o_ref):
    # x_ref: (ts, B, D), pe_ref: (ts, 1, D) — broadcast add over batch dim.
    y = x_ref[...].astype(jnp.float32) + pe_ref[...].astype(jnp.float32)
    o_ref[...] = y.astype(o_ref.dtype)


def _pe_add_dropout_kernel(x_ref, pe_ref, bits_ref, o_ref, *, keep_threshold, inv_keep):
    # TODO(synk): dropout mask bits come from jax.random (host-side), so the
    # random pattern will not bit-match torch.nn.Dropout; semantics (zero
    # w.p. p, scale survivors by 1/(1-p)) are reproduced exactly.
    y = x_ref[...].astype(jnp.float32) + pe_ref[...].astype(jnp.float32)
    keep = bits_ref[...] < jnp.uint32(keep_threshold)   # P(keep) = threshold / 2^32
    y = jnp.where(keep, y * jnp.float32(inv_keep), 0.0)
    o_ref[...] = y.astype(o_ref.dtype)


# ----------------------------------------------------------------------------
# Tiling helper
# ----------------------------------------------------------------------------
def _choose_seq_tile(S, B, D, itemsize, target_bytes=2 << 20):
    """Pick a sequence-tile so one x block is ~2 MiB (v7x-safe VMEM budget)."""
    rows = max(1, target_bytes // max(1, B * D * itemsize))
    ts = min(S, int(rows))
    if ts < S and ts > 8:
        ts -= ts % 8            # keep whole-8 row groups when actually tiling
    return max(1, ts)


# ----------------------------------------------------------------------------
# Wrapper
# ----------------------------------------------------------------------------
def positional_encoding_forward(x, pe, *, dropout_p=0.1, training=False, seed=0):
    """x: (S, B, D).  pe: (max_len, 1, D).  Returns (S, B, D)."""
    S, B, D = x.shape
    pe_s = pe[:S]                                        # (S, 1, D), static slice (glue)

    itemsize = jnp.dtype(x.dtype).itemsize
    ts = _choose_seq_tile(S, B, D, itemsize)
    grid = (pl.cdiv(S, ts),)

    x_spec = pl.BlockSpec((ts, B, D), lambda i: (i, 0, 0))
    pe_spec = pl.BlockSpec((ts, 1, D), lambda i: (i, 0, 0))   # reused across batch
    out_shape = jax.ShapeDtypeStruct((S, B, D), x.dtype)

    params = pltpu.CompilerParams(
        dimension_semantics=("parallel",),               # lets v7x shard across its 2 TCs
        vmem_limit_bytes=32 * 1024 * 1024,               # explicit budget, safe on 64 MiB v7x
    )

    if (not training) or dropout_p == 0.0:
        # Eval-mode dropout is identity: just the (pipelined) broadcast add.
        # (In a full model, XLA could also fuse this add; the Pallas path is
        #  kept so eval/train share one code path.)
        return pl.pallas_call(
            _pe_add_kernel,
            out_shape=out_shape,
            grid=grid,
            in_specs=[x_spec, pe_spec],
            out_specs=x_spec,
            input_output_aliases={0: 0},                 # donate x's HBM buffer
            compiler_params=params,
        )(x, pe_s)

    keep_prob = 1.0 - float(dropout_p)
    keep_threshold = min(int(round(keep_prob * (1 << 32))), (1 << 32) - 1)
    bits = jax.random.bits(jax.random.PRNGKey(seed), (S, B, D), dtype=jnp.uint32)

    kernel = functools.partial(
        _pe_add_dropout_kernel,
        keep_threshold=keep_threshold,
        inv_keep=1.0 / keep_prob,
    )
    return pl.pallas_call(
        kernel,
        out_shape=out_shape,
        grid=grid,
        in_specs=[x_spec, pe_spec, x_spec],              # bits tiled identically to x
        out_specs=x_spec,
        input_output_aliases={0: 0},                     # donate x's HBM buffer
        compiler_params=params,
    )(x, pe_s, bits)


# ----------------------------------------------------------------------------
# Demo / self-check
# ----------------------------------------------------------------------------
if __name__ == "__main__":
    S, B, D = 8, 2, 32           # seq_len, batch, d_model
    MAX_LEN = 5000
    DROPOUT_P = 0.1

    key = jax.random.PRNGKey(0)
    x = jax.random.normal(key, (S, B, D), dtype=jnp.float32)
    pe = make_pe(D, max_len=MAX_LEN)
    ref = x + pe[:S]             # computed before the calls (x is donated)

    # eval mode (dropout = identity): must match x + pe[:S]
    out_eval = positional_encoding_forward(x, pe, dropout_p=DROPOUT_P, training=False)
    out_eval = jax.block_until_ready(out_eval)
    assert out_eval.shape == (S, B, D)
    assert jnp.allclose(out_eval, ref, atol=1e-6), "eval-mode mismatch vs reference"

    # training mode (dropout fused into the kernel)
    out_train = positional_encoding_forward(
        x, pe, dropout_p=DROPOUT_P, training=True, seed=0
    )
    out_train = jax.block_until_ready(out_train)
    assert out_train.shape == (S, B, D)
    # every surviving element equals ref / (1 - p); dropped elements are 0
    scaled = ref / (1.0 - DROPOUT_P)
    ok = jnp.logical_or(
        jnp.isclose(out_train, 0.0, atol=1e-6),
        jnp.isclose(out_train, scaled, atol=1e-5, rtol=1e-5),
    )
    assert bool(jnp.all(ok)), "training-mode dropout semantics violated"

    print("KERNEL_OK")
</pallas_src>

<mosaic_0001>
module attributes {stable_mosaic.version = 11 : i64} {
  func.func @_pe_add_kernel(%arg0: i32, %arg1: memref<8x2x32xf32, #tpu.memory_space<vmem>>, %arg2: memref<8x1x32xf32, #tpu.memory_space<vmem>>, %arg3: memref<8x2x32xf32, #tpu.memory_space<vmem>>) attributes {dimension_semantics = [#tpu.dimension_semantics<parallel>], iteration_bounds = array<i64: 1>, scalar_prefetch = 0 : i64, scratch_operands = 0 : i64, tpu.core_type = #tpu.core_type<tc>, window_params = [{transform_indices = @transform_0, window_bounds = array<i64: 8, 2, 32>}, {transform_indices = @transform_1, window_bounds = array<i64: 8, 1, 32>}, {transform_indices = @transform_2, window_bounds = array<i64: 8, 2, 32>}]} {
    %c0 = arith.constant 0 : index
    %c0_0 = arith.constant 0 : index
    %c0_1 = arith.constant 0 : index
    %0 = vector.load %arg1[%c0, %c0_0, %c0_1] : memref<8x2x32xf32, #tpu.memory_space<vmem>>, vector<8x2x32xf32>
    %c0_2 = arith.constant 0 : index
    %c0_3 = arith.constant 0 : index
    %c0_4 = arith.constant 0 : index
    %1 = vector.load %arg2[%c0_2, %c0_3, %c0_4] : memref<8x1x32xf32, #tpu.memory_space<vmem>>, vector<8x1x32xf32>
    %2 = vector.broadcast %1 : vector<8x1x32xf32> to vector<8x2x32xf32>
    %3 = arith.addf %0, %2 : vector<8x2x32xf32>
    %c0_5 = arith.constant 0 : index
    %c0_6 = arith.constant 0 : index
    %c0_7 = arith.constant 0 : index
    %4 = vector.load %arg3[%c0_5, %c0_6, %c0_7] : memref<8x2x32xf32, #tpu.memory_space<vmem>>, vector<8x2x32xf32>
    tpu.vector_store %arg3[%c0_5, %c0_6, %c0_7], %3 {strides = array<i32>} : memref<8x2x32xf32, #tpu.memory_space<vmem>>, vector<8x2x32xf32>,
    return
  }
  func.func @transform_0(%arg0: i32) -> (i32, i32, i32) {
    %c0_i32 = arith.constant 0 : i32
    %c0_i32_0 = arith.constant 0 : i32
    %c0_i32_1 = arith.constant 0 : i32
    return %arg0, %c0_i32, %c0_i32_0 : i32, i32, i32
  }
  func.func @transform_1(%arg0: i32) -> (i32, i32, i32) {
    %c0_i32 = arith.constant 0 : i32
    %c0_i32_0 = arith.constant 0 : i32
    %c0_i32_1 = arith.constant 0 : i32
    return %arg0, %c0_i32, %c0_i32_0 : i32, i32, i32
  }
  func.func @transform_2(%arg0: i32) -> (i32, i32, i32) {
    %c0_i32 = arith.constant 0 : i32
    %c0_i32_0 = arith.constant 0 : i32
    %c0_i32_1 = arith.constant 0 : i32
    return %arg0, %c0_i32, %c0_i32_0 : i32, i32, i32
  }
}

</mosaic_0001>

<bundles_post_ra>
// kernel: tpu_custom_call.1
= control target key start
LH: loop header
LB: loop body
LE: loop exit
PB: predicated region body
PF: predicated region fallthrough
CT: control target
= control target key end

     0   :  { %7 = vsyncpa [#allocation3], 0  ;;  %s238_s0 = inlined_call_operand.hbm [shape: f32[8,2,32], index: 0, kind: input, shape index: {}, may-alias: {0,2}]   ;;  %s239_s1 = inlined_call_operand.vmem [shape: f32[8,1,32], index: 1, kind: input, shape index: {}]   ;;  %s240_s2 = inlined_call_operand.hbm [shape: f32[8,2,32], index: 2, kind: output, shape index: {}, may-alias: {0,2}]  }
   0x1   :  { %8 = vsyncpa [#allocation4], 0  ;;  %s13_s11 = sshll.u32 %s238_s0, 4  ;;  %s168_s12 = smov [#allocation2]   ;;  %s14_s11 = int_to_ptr.hbm [resolvable:$true] %s13_s11 }
   0x2   :  { %s15_s13 = sshll.u32 %s168_s12, 4  ;;  %s169_s14 = smov 32   ;;  %s16_s13 = int_to_ptr.vmem [resolvable:$true] %s15_s13 }
   0x3   :  { %s170_s15 = smov 2  }
   0x4   :  { %21 = dma.hbm_to_vmem [thread:$0]  %s14_s11, 256, %s16_s13, [#allocation3], %s169_s14, %s169_s14, %s170_s15  }
   0x5   :  { %164 = dma.done.wait [#allocation3], 256  }
   0x6   :  { %165 = vsyncadd [#allocation3], 4294967040  ;;  %vm76_vm0 = vcmask 254976   ;;  %s171_s16 = smov [#allocation5]   ;;  %s91_s0 = sshll.u32 %s240_s2, 4  ;;  %s92_s0 = int_to_ptr.hbm [resolvable:$true] %s91_s0 }
   0x7   :  { %s193_s17 = sshll.u32 %s171_s16, 4  ;;  %v28_v0 = vld [vmem:[#allocation2] sm:$0x3]  ;;  %v29_v2 = vld [vmem:[#allocation2 + $0x2] sm:$0x3]  ;;  %s90_s17 = int_to_ptr.vmem [resolvable:$true] %s193_s17 }
   0x8   :  { %v108_v1 = vld [vmem:[%s239_s1] ss:$0 sm:$0xff]  ;;  %v109_v3 = vld [vmem:[%s239_s1 + $0x1] ss:$0 sm:$0xff]  ;;  %v30_v5 = vld [vmem:[#allocation2 + $0x4] sm:$0x3] }
   0x9   :  { %v68_v4 = vadd.f32 %v108_v1, %v28_v0  ;;  %v110_v6 = vld [vmem:[%s239_s1 + $0x2] ss:$0 sm:$0xff]  ;;  %v69_v7 = vadd.f32 %v109_v3, %v29_v2  ;;  %v31_v8 = vld [vmem:[#allocation2 + $0x6] sm:$0x3]  ;;  %v111_v9 = vld [vmem:[%s239_s1 + $0x3] ss:$0 sm:$0xff] }
   0xa   :  { %v70_v10 = vadd.f32 %v110_v6, %v30_v5  ;;  %v32_v11 = vld [vmem:[#allocation2 + $0x8] sm:$0x3]  ;;  %v71_v12 = vadd.f32 %v111_v9, %v31_v8  ;;  %v112_v13 = vld [vmem:[%s239_s1 + $0x4] ss:$0 sm:$0xff]  ;;  %v33_v14 = vld [vmem:[#allocation2 + $0xa] sm:$0x3] }
   0xb   :  { %77 = vst.msk [vmem:[#allocation5] sm:$0x3] %vm76_vm0, %v68_v4  ;;  %v113_v15 = vld [vmem:[%s239_s1 + $0x5] ss:$0 sm:$0xff]  ;;  %v72_v16 = vadd.f32 %v112_v13, %v32_v11  ;;  %v34_v17 = vld [vmem:[#allocation2 + $0xc] sm:$0x3] }
   0xc   :  { %78 = vst.msk [vmem:[#allocation5 + $0x2] sm:$0x3] %vm76_vm0, %v69_v7  ;;  %v73_v18 = vadd.f32 %v113_v15, %v33_v14  ;;  %v114_v19 = vld [vmem:[%s239_s1 + $0x6] ss:$0 sm:$0xff]  ;;  %v35_v20 = vld [vmem:[#allocation2 + $0xe] sm:$0x3] }
   0xd   :  { %79 = vst.msk [vmem:[#allocation5 + $0x4] sm:$0x3] %vm76_vm0, %v70_v10  ;;  %v115_v21 = vld [vmem:[%s239_s1 + $0x7] ss:$0 sm:$0xff]  ;;  %v74_v22 = vadd.f32 %v114_v19, %v34_v17 }
   0xe   :  { %80 = vst.msk [vmem:[#allocation5 + $0x6] sm:$0x3] %vm76_vm0, %v71_v12  ;;  %v75_v23 = vadd.f32 %v115_v21, %v35_v20 }
   0xf   :  { %81 = vst.msk [vmem:[#allocation5 + $0x8] sm:$0x3] %vm76_vm0, %v72_v16 }
  0x10   :  { %82 = vst.msk [vmem:[#allocation5 + $0xa] sm:$0x3] %vm76_vm0, %v73_v18 }
  0x11   :  { %83 = vst.msk [vmem:[#allocation5 + $0xc] sm:$0x3] %vm76_vm0, %v74_v22 }
  0x12   :  { %84 = vst.msk [vmem:[#allocation5 + $0xe] sm:$0x3] %vm76_vm0, %v75_v23 }
  0x13   :  { %97 = dma.vmem_to_hbm [thread:$0]  %s90_s17, 256, %s92_s0, [#allocation4], %s169_s14, %s169_s14, %s170_s15  }
  0x14   :  { %166 = dma.done.wait [#allocation4], 256  }
  0x15   :  { %167 = vsyncadd [#allocation4], 4294967040 }
  0x16   :  { %102 = vsyncpa [#allocation3], 1 }
  0x17   :  { %103 = vsyncpa [#allocation4], 1 }

</bundles_post_ra>
